<compile_context>
chip_gen: v7x
topology: tpu7x:2x2x1
jax: 0.10.0
libtpu: 0.0.40
codegen_flags: <defaults>
</compile_context>

<pallas_src>
import math
from functools import partial

import jax
import jax.numpy as jnp
from jax import lax
from jax.experimental import pallas as pl
from jax.experimental.pallas import tpu as pltpu


def _round_up(x, m):
    return ((x + m - 1) // m) * m


def _pick_tile(padded, unit, target):
    """Largest multiple of `unit` that divides `padded` and is <= max(target, unit)."""
    n_units = padded // unit
    max_units = max(int(target) // unit, 1)
    for d in range(min(max_units, n_units), 0, -1):
        if n_units % d == 0:
            return d * unit
    return unit


def _vmem_limit_bytes():
    """64 MiB on 128-MiB-VMEM chips (v5e/v6e), 32 MiB on v7x (64 MiB physical)."""
    cap = None
    try:
        info = pltpu.get_tpu_info()
        cap = getattr(info, "vmem_capacity_bytes", None)
    except Exception:
        cap = None
    if cap is None:
        return 32 * 1024 * 1024
    return int(min(cap // 2, 64 * 1024 * 1024))


def _working_set_bytes(tm, tn, tk):
    # Double-buffered f32 inputs (mean, var, W tile, bias row) + double-buffered
    # f32 outputs (mean, var). No scratch accumulators anymore.
    in_bytes = 2 * 4 * (2 * tm * tk + tn * tk + tn)
    out_bytes = 2 * 4 * 2 * tm * tn
    return in_bytes + out_bytes


def pad_params(weight, bias):
    """Pad W/b once (e.g. at parameter init) so the forward path does no HBM copy."""
    N, K = weight.shape
    Np, Kp = _round_up(N, 128), _round_up(K, 128)
    if (Np, Kp) != (N, K):
        weight = jnp.pad(weight, ((0, Np - N), (0, Kp - K)))
    if Np != N:
        bias = jnp.pad(bias, (0, Np - N))
    return weight, bias


def adf_linear_kernel(mean_ref, var_ref, w_ref, b_ref,
                      out_mean_ref, out_var_ref, *, compute_dtype):
    k = pl.program_id(2)

    w = w_ref[...]                       # [tn, tk] — loaded once, shared by both paths
    w_sq = w * w                         # square in f32 (VPU) for variance accuracy
    m = mean_ref[...]
    v = var_ref[...]
    if compute_dtype != jnp.float32:
        m = m.astype(compute_dtype)
        v = v.astype(compute_dtype)
        w = w.astype(compute_dtype)
        w_sq = w_sq.astype(compute_dtype)

    # Contract on the last axis of both operands: (tm, tk) x (tn, tk) -> (tm, tn).
    dn = (((1,), (1,)), ((), ()))
    mean_part = lax.dot_general(m, w, dn, preferred_element_type=jnp.float32)
    var_part = lax.dot_general(v, w_sq, dn, preferred_element_type=jnp.float32)

    # Output blocks are resident across k (block index independent of k): accumulate
    # directly into them — no scratch accumulators, no extra VMEM->VMEM copies.
    @pl.when(k == 0)
    def _init():
        out_mean_ref[...] = mean_part
        out_var_ref[...] = var_part

    @pl.when(k > 0)
    def _accumulate():
        out_mean_ref[...] += mean_part
        out_var_ref[...] += var_part

    @pl.when(k == pl.num_programs(2) - 1)
    def _finalize():
        out_mean_ref[...] += b_ref[...]   # bias added exactly once; mean path only


def adf_linear(in_mean, in_var, weight, bias, *, use_bf16=False):
    """ADF diag-mode linear layer.

    in_mean, in_var : [B, in_features]
    weight          : [N, K] (possibly already padded to multiples of 128 via pad_params)
    bias            : [N]    (ditto)
    returns (out_mean, out_var), each [B, out_features]
    """
    B, K = in_mean.shape
    Nw, Kw = weight.shape
    assert bias.shape == (Nw,)
    assert Kw >= K and Kw == _round_up(Kw, 128) or Kw == K, "weight K mismatch"

    # Hardware-minimum padding only: B->8, N/K->128.
    Bp = _round_up(B, 8)
    Np = _round_up(Nw, 128)
    Kp = _round_up(max(K, Kw), 128)

    mean_p = in_mean if (Bp == B and Kp == K) else jnp.pad(
        in_mean, ((0, Bp - B), (0, Kp - K)))
    var_p = in_var if (Bp == B and Kp == K) else jnp.pad(
        in_var, ((0, Bp - B), (0, Kp - K)))
    w_p = weight if (Np == Nw and Kp == Kw) else jnp.pad(
        weight, ((0, Np - Nw), (0, Kp - Kw)))
    b_p = (bias if Np == Nw else jnp.pad(bias, (0, Np - Nw))).reshape(1, Np)

    # --- Tile selection: divisors of the padded dims, sized to the VMEM budget. ---
    vmem_limit = _vmem_limit_bytes()
    budget = int(vmem_limit * 0.7)       # headroom for compiler-internal scratch

    tm = _pick_tile(Bp, 8, 512)
    tn = _pick_tile(Np, 128, 512)
    tk = _pick_tile(Kp, 128, 4096)
    while tk > 128 and _working_set_bytes(tm, tn, tk) > budget:
        tk = _pick_tile(Kp, 128, tk // 2)
    while tn > 128 and _working_set_bytes(tm, tn, tk) > budget:
        tn = _pick_tile(Np, 128, tn // 2)
    while tm > 8 and _working_set_bytes(tm, tn, tk) > budget:
        tm = _pick_tile(Bp, 8, tm // 2)

    # v7x megacore: make sure both TensorCores get work on the parallel axes.
    if (Bp // tm) * (Np // tn) < 2:
        if Np // 128 >= 2:
            tn = _pick_tile(Np, 128, Np // 2)
        elif Bp // 8 >= 2:
            tm = _pick_tile(Bp, 8, Bp // 2)

    grid = (Bp // tm, Np // tn, Kp // tk)
    m_blocks = Bp // tm

    # Advisory cost estimate: two matmuls; W is re-read (and re-squared) once per M-block.
    flops = 2 * 2 * Bp * Np * Kp + m_blocks * Np * Kp
    bytes_accessed = 4 * (2 * Bp * Kp                 # mean + var read once
                          + m_blocks * Np * Kp        # W re-streamed per M-block
                          + m_blocks * Np             # bias per M-block
                          + 2 * Bp * Np)              # two f32 outputs
    cost = pl.CostEstimate(flops=flops, transcendentals=0,
                           bytes_accessed=bytes_accessed)

    compute_dtype = jnp.bfloat16 if use_bf16 else jnp.float32
    kernel = partial(adf_linear_kernel, compute_dtype=compute_dtype)

    out_mean_p, out_var_p = pl.pallas_call(
        kernel,
        out_shape=(
            jax.ShapeDtypeStruct((Bp, Np), jnp.float32),
            jax.ShapeDtypeStruct((Bp, Np), jnp.float32),
        ),
        grid_spec=pltpu.PrefetchScalarGridSpec(
            num_scalar_prefetch=0,
            grid=grid,
            in_specs=[
                pl.BlockSpec((tm, tk), lambda i, j, k: (i, k)),   # in_mean
                pl.BlockSpec((tm, tk), lambda i, j, k: (i, k)),   # in_var
                pl.BlockSpec((tn, tk), lambda i, j, k: (j, k)),   # weight
                pl.BlockSpec((1, tn), lambda i, j, k: (0, j)),    # bias row
            ],
            out_specs=(
                pl.BlockSpec((tm, tn), lambda i, j, k: (i, j)),
                pl.BlockSpec((tm, tn), lambda i, j, k: (i, j)),
            ),
        ),
        compiler_params=pltpu.CompilerParams(
            dimension_semantics=("parallel", "parallel", "arbitrary"),
            vmem_limit_bytes=vmem_limit,
        ),
        cost_estimate=cost,
    )(mean_p, var_p, w_p, b_p)

    return out_mean_p[:B, :Nw], out_var_p[:B, :Nw]


def init_params(key, in_features, out_features):
    """Deterministic init mirroring the PyTorch module's reset_parameters:
    kaiming_uniform_(a=sqrt(5)) -> U(-1/sqrt(fan_in), 1/sqrt(fan_in)) for weight,
    uniform bias in (-1/sqrt(fan_in), 1/sqrt(fan_in))."""
    kw, kb = jax.random.split(key)
    bound = 1.0 / math.sqrt(in_features)
    weight = jax.random.uniform(
        kw, (out_features, in_features), jnp.float32, -bound, bound)
    bias = jax.random.uniform(kb, (out_features,), jnp.float32, -bound, bound)
    return weight, bias


def _ref(in_mean, in_var, weight, bias):
    return in_mean @ weight.T + bias, in_var @ (weight * weight).T


# TODO(synk): only the "diag" covariance mode is implemented; "lowrank"/"half"/"full"
# modes propagate a full covariance matrix and are out of scope for this kernel.

if __name__ == "__main__":
    key = jax.random.PRNGKey(0)
    k_mean, k_var, k_params, k2 = jax.random.split(key, 4)

    # Small test shape consistent with the module.
    B, in_features, out_features = 8, 32, 16
    in_mean = jax.random.normal(k_mean, (B, in_features), jnp.float32)
    in_var = jax.random.uniform(k_var, (B, in_features), jnp.float32, 0.0, 1.0)
    weight, bias = init_params(k_params, in_features, out_features)

    out_mean, out_var = adf_linear(in_mean, in_var, weight, bias)
    jax.block_until_ready((out_mean, out_var))
    ref_mean, ref_var = _ref(in_mean, in_var, weight, bias)
    assert out_mean.shape == (B, out_features) and out_var.shape == (B, out_features)
    assert jnp.allclose(out_mean, ref_mean, atol=1e-5, rtol=1e-5)
    assert jnp.allclose(out_var, ref_var, atol=1e-5, rtol=1e-5)

    # Second check: multi-tile K/N accumulation, bias-once finalize, pre-padded params,
    # and the megacore tn-split path (grid starts at 1x1 parallel blocks).
    k2m, k2v, k2p = jax.random.split(k2, 3)
    B2, K2, N2 = 16, 1024, 384
    m2 = jax.random.normal(k2m, (B2, K2), jnp.float32)
    v2 = jax.random.uniform(k2v, (B2, K2), jnp.float32, 0.0, 1.0)
    w2, b2 = init_params(k2p, K2, N2)
    w2p, b2p = pad_params(w2, b2)        # pad-once-at-init path (no per-call HBM copy)
    om2, ov2 = adf_linear(m2, v2, w2p, b2p)
    jax.block_until_ready((om2, ov2))
    rm2, rv2 = _ref(m2, v2, w2, b2)
    assert om2.shape == (B2, N2) and ov2.shape == (B2, N2)
    assert jnp.allclose(om2, rm2, atol=1e-4, rtol=1e-4)
    assert jnp.allclose(ov2, rv2, atol=1e-4, rtol=1e-4)

    print("KERNEL_OK")
</pallas_src>

<mosaic_0001>
module attributes {stable_mosaic.version = 11 : i64} {
  func.func @adf_linear_kernel(%arg0: i32, %arg1: i32, %arg2: i32, %arg3: memref<8x128xf32, #tpu.memory_space<vmem>>, %arg4: memref<8x128xf32, #tpu.memory_space<vmem>>, %arg5: memref<128x128xf32, #tpu.memory_space<vmem>>, %arg6: memref<1x128xf32, #tpu.memory_space<vmem>>, %arg7: memref<8x128xf32, #tpu.memory_space<vmem>>, %arg8: memref<8x128xf32, #tpu.memory_space<vmem>>) attributes {dimension_semantics = [#tpu.dimension_semantics<parallel>, #tpu.dimension_semantics<parallel>, #tpu.dimension_semantics<arbitrary>], iteration_bounds = array<i64: 1, 1, 1>, scalar_prefetch = 0 : i64, scratch_operands = 0 : i64, tpu.core_type = #tpu.core_type<tc>, window_params = [{transform_indices = @transform_0, window_bounds = array<i64: 8, 128>}, {transform_indices = @transform_1, window_bounds = array<i64: 8, 128>}, {transform_indices = @transform_2, window_bounds = array<i64: 128, 128>}, {transform_indices = @transform_3, window_bounds = array<i64: 1, 128>}, {transform_indices = @transform_4, window_bounds = array<i64: 8, 128>}, {transform_indices = @transform_5, window_bounds = array<i64: 8, 128>}]} {
    %c0 = arith.constant 0 : index
    %c0_0 = arith.constant 0 : index
    %0 = vector.load %arg5[%c0, %c0_0] : memref<128x128xf32, #tpu.memory_space<vmem>>, vector<128x128xf32>
    %1 = arith.mulf %0, %0 : vector<128x128xf32>
    %c0_1 = arith.constant 0 : index
    %c0_2 = arith.constant 0 : index
    %2 = vector.load %arg3[%c0_1, %c0_2] : memref<8x128xf32, #tpu.memory_space<vmem>>, vector<8x128xf32>
    %c0_3 = arith.constant 0 : index
    %c0_4 = arith.constant 0 : index
    %3 = vector.load %arg4[%c0_3, %c0_4] : memref<8x128xf32, #tpu.memory_space<vmem>>, vector<8x128xf32>
    %cst = arith.constant dense<0.000000e+00> : vector<8x128xf32>
    %4 = tpu.matmul %2, %0, %cst {dimension_numbers = #tpu.dot_dimension_numbers<[1], [1], [0], [0], [0, 0, 1, 0], [], []>} : vector<8x128xf32>, vector<128x128xf32>, vector<8x128xf32> -> vector<8x128xf32>
    %cst_5 = arith.constant dense<0.000000e+00> : vector<8x128xf32>
    %5 = tpu.matmul %3, %1, %cst_5 {dimension_numbers = #tpu.dot_dimension_numbers<[1], [1], [0], [0], [0, 0, 1, 0], [], []>} : vector<8x128xf32>, vector<128x128xf32>, vector<8x128xf32> -> vector<8x128xf32>
    %c0_i32 = arith.constant 0 : i32
    %6 = arith.cmpi eq, %arg2, %c0_i32 : i32
    %7 = arith.extui %6 : i1 to i32
    %c0_i32_6 = arith.constant 0 : i32
    %8 = arith.cmpi ne, %7, %c0_i32_6 : i32
    scf.if %8 {
      %c0_11 = arith.constant 0 : index
      %c0_12 = arith.constant 0 : index
      %15 = vector.load %arg7[%c0_11, %c0_12] : memref<8x128xf32, #tpu.memory_space<vmem>>, vector<8x128xf32>
      tpu.vector_store %arg7[%c0_11, %c0_12], %4 {strides = array<i32>} : memref<8x128xf32, #tpu.memory_space<vmem>>, vector<8x128xf32>,
      %c0_13 = arith.constant 0 : index
      %c0_14 = arith.constant 0 : index
      %16 = vector.load %arg8[%c0_13, %c0_14] : memref<8x128xf32, #tpu.memory_space<vmem>>, vector<8x128xf32>
      tpu.vector_store %arg8[%c0_13, %c0_14], %5 {strides = array<i32>} : memref<8x128xf32, #tpu.memory_space<vmem>>, vector<8x128xf32>,
    } else {
    }
    %c0_i32_7 = arith.constant 0 : i32
    %9 = arith.cmpi sgt, %arg2, %c0_i32_7 : i32
    %10 = arith.extui %9 : i1 to i32
    %c0_i32_8 = arith.constant 0 : i32
    %11 = arith.cmpi ne, %10, %c0_i32_8 : i32
    scf.if %11 {
      %c0_11 = arith.constant 0 : index
      %c0_12 = arith.constant 0 : index
      %15 = vector.load %arg7[%c0_11, %c0_12] : memref<8x128xf32, #tpu.memory_space<vmem>>, vector<8x128xf32>
      %16 = arith.addf %15, %4 : vector<8x128xf32>
      %c0_13 = arith.constant 0 : index
      %c0_14 = arith.constant 0 : index
      %17 = vector.load %arg7[%c0_13, %c0_14] : memref<8x128xf32, #tpu.memory_space<vmem>>, vector<8x128xf32>
      tpu.vector_store %arg7[%c0_13, %c0_14], %16 {strides = array<i32>} : memref<8x128xf32, #tpu.memory_space<vmem>>, vector<8x128xf32>,
      %c0_15 = arith.constant 0 : index
      %c0_16 = arith.constant 0 : index
      %18 = vector.load %arg8[%c0_15, %c0_16] : memref<8x128xf32, #tpu.memory_space<vmem>>, vector<8x128xf32>
      %19 = arith.addf %18, %5 : vector<8x128xf32>
      %c0_17 = arith.constant 0 : index
      %c0_18 = arith.constant 0 : index
      %20 = vector.load %arg8[%c0_17, %c0_18] : memref<8x128xf32, #tpu.memory_space<vmem>>, vector<8x128xf32>
      tpu.vector_store %arg8[%c0_17, %c0_18], %19 {strides = array<i32>} : memref<8x128xf32, #tpu.memory_space<vmem>>, vector<8x128xf32>,
    } else {
    }
    %c0_i32_9 = arith.constant 0 : i32
    %12 = arith.cmpi eq, %arg2, %c0_i32_9 : i32
    %13 = arith.extui %12 : i1 to i32
    %c0_i32_10 = arith.constant 0 : i32
    %14 = arith.cmpi ne, %13, %c0_i32_10 : i32
    scf.if %14 {
      %c0_11 = arith.constant 0 : index
      %c0_12 = arith.constant 0 : index
      %15 = vector.load %arg7[%c0_11, %c0_12] : memref<8x128xf32, #tpu.memory_space<vmem>>, vector<8x128xf32>
      %c0_13 = arith.constant 0 : index
      %c0_14 = arith.constant 0 : index
      %16 = vector.load %arg6[%c0_13, %c0_14] : memref<1x128xf32, #tpu.memory_space<vmem>>, vector<1x128xf32>
      %17 = vector.broadcast %16 : vector<1x128xf32> to vector<8x128xf32>
      %18 = arith.addf %15, %17 : vector<8x128xf32>
      %c0_15 = arith.constant 0 : index
      %c0_16 = arith.constant 0 : index
      %19 = vector.load %arg7[%c0_15, %c0_16] : memref<8x128xf32, #tpu.memory_space<vmem>>, vector<8x128xf32>
      tpu.vector_store %arg7[%c0_15, %c0_16], %18 {strides = array<i32>} : memref<8x128xf32, #tpu.memory_space<vmem>>, vector<8x128xf32>,
    } else {
    }
    return
  }
  func.func @transform_0(%arg0: i32, %arg1: i32, %arg2: i32) -> (i32, i32) {
    %c0_i32 = arith.constant 0 : i32
    return %arg0, %arg2 : i32, i32
  }
  func.func @transform_1(%arg0: i32, %arg1: i32, %arg2: i32) -> (i32, i32) {
    %c0_i32 = arith.constant 0 : i32
    return %arg0, %arg2 : i32, i32
  }
  func.func @transform_2(%arg0: i32, %arg1: i32, %arg2: i32) -> (i32, i32) {
    %c0_i32 = arith.constant 0 : i32
    return %arg1, %arg2 : i32, i32
  }
  func.func @transform_3(%arg0: i32, %arg1: i32, %arg2: i32) -> (i32, i32) {
    %c0_i32 = arith.constant 0 : i32
    %c0_i32_0 = arith.constant 0 : i32
    return %c0_i32, %arg1 : i32, i32
  }
  func.func @transform_4(%arg0: i32, %arg1: i32, %arg2: i32) -> (i32, i32) {
    %c0_i32 = arith.constant 0 : i32
    return %arg0, %arg1 : i32, i32
  }
  func.func @transform_5(%arg0: i32, %arg1: i32, %arg2: i32) -> (i32, i32) {
    %c0_i32 = arith.constant 0 : i32
    return %arg0, %arg1 : i32, i32
  }
}

</mosaic_0001>

<bundles_post_ra>
// kernel: tpu_custom_call.1
= control target key start
LH: loop header
LB: loop body
LE: loop exit
PB: predicated region body
PF: predicated region fallthrough
CT: control target
= control target key end

     0   :  { %11 = vsyncpa [#allocation3], 0  ;;  %s698_s0 = inlined_call_operand.hbm [shape: f32[8,128], index: 0, kind: input, shape index: {}]   ;;  %s699_s1 = inlined_call_operand.hbm [shape: f32[8,128], index: 1, kind: input, shape index: {}]   ;;  %s700_s2 = inlined_call_operand.hbm [shape: f32[128,128], index: 2, kind: input, shape index: {}]   ;;  %s701_s3 = inlined_call_operand.vmem [shape: f32[1,128], index: 3, kind: input, shape index: {}]   ;;  %s702_s4 = inlined_call_operand.hbm [shape: f32[8,128], index: 4, kind: output, shape index: {0}]   ;;  %s703_s5 = inlined_call_operand.hbm [shape: f32[8,128], index: 5, kind: output, shape index: {1}]  }
   0x1   :  { %12 = vsyncpa [#allocation6], 0 }
   0x2   :  { %13 = vsyncpa [#allocation4], 0 }
   0x3   :  { %14 = vsyncpa [#allocation10], 0  ;;  %s572_s18 = smov [#allocation5]   ;;  %s573_s20 = smov [#allocation2]  }
   0x4   :  { %s31_s19 = sshll.u32 %s572_s18, 4  ;;  %s21_s21 = sshll.u32 %s573_s20, 4  ;;  %s32_s19 = int_to_ptr.vmem [resolvable:$true] %s31_s19  ;;  %s22_s21 = int_to_ptr.vmem [resolvable:$true] %s21_s21 }
   0x5   :  { %s454_s24 = scalar_lea.hbm %s699_s1, 128 }
   0x6   :  { %p455_p0 = scmp.ne.s32.totalorder %s699_s1, %s454_s24  ;;  %p458_p1 = scmp.lt.u32.totalorder %s454_s24, %s699_s1 }
   0x8   :  { %p460_p2 = pnand %p458_p1, %p455_p0 }
   0xa   :  { %463 = shalt.err (!%p460_p2)
}
   0xb   :  { %s464_s29 = scalar_lea.vmem %s32_s19, 128  ;;  %p469_p4 = scmp.lt.s32.totalorder %s32_s19, %s32_s19 }
   0xc   :  { %p465_p3 = scmp.ne.s32.totalorder %s32_s19, %s464_s29  ;;  %p470_p5 = scmp.lt.s32.totalorder %s464_s29, %s464_s29 }
   0xe   :  { %p471_p6 = por %p470_p5, %p469_p4 }
  0x10   :  { %p472_p7 = pnand %p471_p6, %p465_p3 }
  0x12   :  { %475 = shalt.err (!%p472_p7)
}
  0x13   :  { %34 = dma.hbm_to_vmem [thread:$0]  %s699_s1, 128, %s32_s19, [#allocation6]  }
  0x14   :  { %s476_s9 = scalar_lea.hbm %s698_s0, 128 }
  0x15   :  { %p477_p8 = scmp.ne.s32.totalorder %s698_s0, %s476_s9  ;;  %p480_p9 = scmp.lt.u32.totalorder %s476_s9, %s698_s0 }
  0x17   :  { %p482_p10 = pnand %p480_p9, %p477_p8 }
  0x19   :  { %485 = shalt.err (!%p482_p10)
}
  0x1a   :  { %s486_s14 = scalar_lea.vmem %s22_s21, 128  ;;  %p491_p12 = scmp.lt.s32.totalorder %s22_s21, %s22_s21 }
  0x1b   :  { %p487_p11 = scmp.ne.s32.totalorder %s22_s21, %s486_s14  ;;  %p492_p13 = scmp.lt.s32.totalorder %s486_s14, %s486_s14 }
  0x1d   :  { %p493_p0 = por %p492_p13, %p491_p12 }
  0x1f   :  { %p494_p1 = pnand %p493_p0, %p487_p11 }
  0x21   :  { %497 = shalt.err (!%p494_p1)
}
  0x22   :  { %24 = dma.hbm_to_vmem [thread:$0]  %s698_s0, 128, %s22_s21, [#allocation3]  }
  0x23   :  { %s574_s16 = smov [#allocation7]   ;;  %s498_s20 = scalar_lea.hbm %s700_s2, 2048 }
  0x24   :  { %s40_s17 = sshll.u32 %s574_s16, 4  ;;  %p499_p2 = scmp.ne.s32.totalorder %s700_s2, %s498_s20  ;;  %s41_s17 = int_to_ptr.vmem [resolvable:$true] %s40_s17 }
  0x25   :  { %p502_p3 = scmp.lt.u32.totalorder %s498_s20, %s700_s2 }
  0x27   :  { %p504_p4 = pnand %p502_p3, %p499_p2 }
  0x29   :  { %507 = shalt.err (!%p504_p4)
}
  0x2a   :  { %s508_s26 = scalar_lea.vmem %s41_s17, 2048  ;;  %p513_p6 = scmp.lt.s32.totalorder %s41_s17, %s41_s17 }
  0x2b   :  { %p509_p5 = scmp.ne.s32.totalorder %s41_s17, %s508_s26  ;;  %p514_p7 = scmp.lt.s32.totalorder %s508_s26, %s508_s26 }
  0x2d   :  { %p515_p8 = por %p514_p7, %p513_p6 }
  0x2f   :  { %p516_p9 = pnand %p515_p8, %p509_p5 }
  0x31   :  { %519 = shalt.err (!%p516_p9)
}
  0x32   :  { %s575_s0 = smov 128   ;;  %s576_s21 = smov 8  }
  0x33   :  { %46 = dma.hbm_to_vmem [thread:$0]  %s700_s2, 2048, %s41_s17, [#allocation6], %s575_s0, %s575_s0, %s576_s21  }
  0x34   :  { %564 = dma.done.wait [#allocation3], 128  }
  0x35   :  { %565 = vsyncadd [#allocation3], 4294967168 }
  0x36   :  { %566 = dma.done.wait [#allocation6], 2176  }
  0x37   :  { %567 = vsyncadd [#allocation6], 4294965120  ;;  %v577_v0 = vmov 0.0|0.0   ;;  %vm578_vm0 = vmmov 0   ;;  %v579_v1 = vmov 0.0   ;;  %v58_v2 = vld [vmem:[#allocation7] sm:$0xff] }
  0x38   :  { %396 = vmatprep.subr.bf16.mxu0 %v577_v0  ;;  %420 = vmatprep.subr.bf16.mxu1 %v577_v0  ;;  %v59_v3 = vld [vmem:[#allocation7 + $0x8] sm:$0xff]  ;;  %v74_v5 = vmul.f32 %v58_v2, %v58_v2  ;;  %v60_v7 = vld [vmem:[#allocation7 + $0x10] sm:$0xff]  ;;  %v61_v8 = vld [vmem:[#allocation7 + $0x18] sm:$0xff]  ;;  %s580_s30 = smov [#allocation8]   ;;  %s581_s7 = smov [#allocation9]  }
  0x39   :  { %358 = vmatprep.mubr.msk.f32.mxu0 %vm578_vm0, %v579_v1  ;;  %393 = vmatprep.mubr.msk.f32.mxu1 %vm578_vm0, %v579_v1  ;;  %v397_v4 = vpack.c.bf16 %v59_v3, %v58_v2  ;;  %v75_v6 = vmul.f32 %v59_v3, %v59_v3  ;;  %v76_v10 = vmul.f32 %v60_v7, %v60_v7  ;;  %v62_v14 = vld [vmem:[#allocation7 + $0x20] sm:$0xff]  ;;  %v63_v15 = vld [vmem:[#allocation7 + $0x28] sm:$0xff]  ;;  %v64_v20 = vld [vmem:[#allocation7 + $0x30] sm:$0xff]  ;;  %s267_s6 = sshll.u32 %s580_s30, 4  ;;  %s277_s8 = sshll.u32 %s581_s7, 4  ;;  %s268_s6 = int_to_ptr.vmem [resolvable:$true] %s267_s6  ;;  %s667_s8 = int_to_ptr.vmem [resolvable:$true] %s277_s8 }
  0x3a   :  { %v77_v11 = vmul.f32 %v61_v8, %v61_v8  ;;  %v400_v12 = vpack.c.bf16 %v61_v8, %v60_v7  ;;  %v78_v16 = vmul.f32 %v62_v14, %v62_v14  ;;  %v79_v17 = vmul.f32 %v63_v15, %v63_v15  ;;  %v65_v21 = vld [vmem:[#allocation7 + $0x38] sm:$0xff]  ;;  %v66_v26 = vld [vmem:[#allocation7 + $0x40] sm:$0xff]  ;;  %v67_v27 = vld [vmem:[#allocation7 + $0x48] sm:$0xff]  ;;  %s520_s9 = scalar_lea.vmem %s268_s6, 128  ;;  %p525_p11 = scmp.lt.s32.totalorder %s268_s6, %s268_s6 }
  0x3b   :  { %398 = vmatpush3.bf16.xpose.msra.mxu0 %v397_v4  ;;  %v421_v9 = vpack.c.bf16 %v75_v6, %v74_v5  ;;  %v403_v18 = vpack.c.bf16 %v63_v15, %v62_v14  ;;  %v80_v22 = vmul.f32 %v64_v20, %v64_v20  ;;  %v81_v23 = vmul.f32 %v65_v21, %v65_v21  ;;  %v68_v32 = vld [vmem:[#allocation7 + $0x50] sm:$0xff]  ;;  %v69_v33 = vld [vmem:[#allocation7 + $0x58] sm:$0xff]  ;;  %v70_v38 = vld [vmem:[#allocation7 + $0x60] sm:$0xff]  ;;  %p521_p10 = scmp.ne.s32.totalorder %s268_s6, %s520_s9  ;;  %p526_p12 = scmp.lt.s32.totalorder %s520_s9, %s520_s9 }
  0x3c   :  { %399 = vmatprep.subr.bf16.mxu0 %v577_v0  ;;  %v424_v13 = vpack.c.bf16 %v77_v11, %v76_v10  ;;  %v427_v19 = vpack.c.bf16 %v79_v17, %v78_v16  ;;  %v406_v24 = vpack.c.bf16 %v65_v21, %v64_v20  ;;  %v82_v28 = vmul.f32 %v66_v26, %v66_v26  ;;  %v71_v39 = vld [vmem:[#allocation7 + $0x68] sm:$0xff]  ;;  %v72_v44 = vld [vmem:[#allocation7 + $0x70] sm:$0xff]  ;;  %v73_v45 = vld [vmem:[#allocation7 + $0x78] sm:$0xff] }
  0x3d   :  { %422 = vmatpush3.bf16.xpose.msra.mxu1 %v421_v9  ;;  %v430_v25 = vpack.c.bf16 %v81_v23, %v80_v22  ;;  %v83_v29 = vmul.f32 %v67_v27, %v67_v27  ;;  %v409_v30 = vpack.c.bf16 %v67_v27, %v66_v26  ;;  %v84_v34 = vmul.f32 %v68_v32, %v68_v32  ;;  %v90_v50 = vld [vmem:[#allocation2] sm:$0xff]  ;;  %v91_v51 = vld [vmem:[#allocation5] sm:$0xff]  ;;  %p527_p13 = por %p526_p12, %p525_p11 }
  0x3e   :  { %423 = vmatprep.subr.bf16.mxu1 %v577_v0  ;;  %v85_v35 = vmul.f32 %v69_v33, %v69_v33  ;;  %v412_v36 = vpack.c.bf16 %v69_v33, %v68_v32  ;;  %v86_v40 = vmul.f32 %v70_v38, %v70_v38  ;;  %v87_v41 = vmul.f32 %v71_v39, %v71_v39  ;;  %v291_v52 = vld [vmem:[%s701_s3] ss:$0 sm:$0xff] }
  0x3f   :  { %v433_v31 = vpack.c.bf16 %v83_v29, %v82_v28  ;;  %v415_v42 = vpack.c.bf16 %v71_v39, %v70_v38  ;;  %v88_v46 = vmul.f32 %v72_v44, %v72_v44  ;;  %v89_v47 = vmul.f32 %v73_v45, %v73_v45  ;;  %p528_p0 = pnand %p527_p13, %p521_p10 }
  0x40   :  { %v436_v37 = vpack.c.bf16 %v85_v35, %v84_v34  ;;  %v439_v43 = vpack.c.bf16 %v87_v41, %v86_v40  ;;  %v418_v48 = vpack.c.bf16 %v73_v45, %v72_v44 }
  0x41   :  { %v442_v49 = vpack.c.bf16 %v89_v47, %v88_v46 }
  0x43   :  { %401 = vmatpush3.bf16.xpose.msra.mxu0 %v400_v12 }
  0x44   :  { %402 = vmatprep.subr.bf16.mxu0 %v577_v0 }
  0x45   :  { %425 = vmatpush3.bf16.xpose.msra.mxu1 %v424_v13 }
  0x46   :  { %426 = vmatprep.subr.bf16.mxu1 %v577_v0 }
  0x4b   :  { %404 = vmatpush3.bf16.xpose.msra.mxu0 %v403_v18 }
  0x4c   :  { %405 = vmatprep.subr.bf16.mxu0 %v577_v0 }
  0x4d   :  { %428 = vmatpush3.bf16.xpose.msra.mxu1 %v427_v19 }
  0x4e   :  { %429 = vmatprep.subr.bf16.mxu1 %v577_v0 }
  0x53   :  { %407 = vmatpush3.bf16.xpose.msra.mxu0 %v406_v24 }
  0x54   :  { %408 = vmatprep.subr.bf16.mxu0 %v577_v0 }
  0x55   :  { %431 = vmatpush3.bf16.xpose.msra.mxu1 %v430_v25 }
  0x56   :  { %432 = vmatprep.subr.bf16.mxu1 %v577_v0 }
  0x5b   :  { %410 = vmatpush3.bf16.xpose.msra.mxu0 %v409_v30 }
  0x5c   :  { %411 = vmatprep.subr.bf16.mxu0 %v577_v0 }
  0x5d   :  { %434 = vmatpush3.bf16.xpose.msra.mxu1 %v433_v31 }
  0x5e   :  { %435 = vmatprep.subr.bf16.mxu1 %v577_v0 }
  0x63   :  { %413 = vmatpush3.bf16.xpose.msra.mxu0 %v412_v36 }
  0x64   :  { %414 = vmatprep.subr.bf16.mxu0 %v577_v0 }
  0x65   :  { %437 = vmatpush3.bf16.xpose.msra.mxu1 %v436_v37 }
  0x66   :  { %438 = vmatprep.subr.bf16.mxu1 %v577_v0 }
  0x6b   :  { %416 = vmatpush3.bf16.xpose.msra.mxu0 %v415_v42 }
  0x6c   :  { %417 = vmatprep.subr.bf16.mxu0 %v577_v0 }
  0x6d   :  { %440 = vmatpush3.bf16.xpose.msra.mxu1 %v439_v43 }
  0x6e   :  { %441 = vmatprep.subr.bf16.mxu1 %v577_v0 }
  0x73   :  { %419 = vmatpush3.bf16.xpose.msra.mxu0 %v418_v48 }
  0x75   :  { %443 = vmatpush3.bf16.xpose.msra.mxu1 %v442_v49 }
  0x7a   :  { %359 = vmatmul.mubr.f32.vlgmr.msra.gmra.mrb[0].mxu0 %v90_v50 }
  0x7c   :  { %394 = vmatmul.mubr.f32.vlgmr.msra.gmra.mrb[0].mxu1 %v91_v51 }
 0x14d   :  { %v158_v53 = vpop.f32.mrb[0].mxu0 }
 0x14e   :  { %v360_v54 = vpop.f32.mrb[1].mxu0  ;;  %v259_v55 = vadd.f32 %v291_v52, %v158_v53 }
 0x14f   :  { %v228_v56 = vpop.f32.mrb[0].mxu1 }
 0x150   :  { %237 = vst [vmem:[#allocation9] sm:$0xff] %v228_v56  ;;  %v395_v57 = vpop.f32.mrb[1].mxu1  ;;  %260 = vst [vmem:[#allocation8] sm:$0xff] %v259_v55 }
 0x151   :  { %531 = shalt.err (!%p528_p0)
}
 0x152   :  { %s532_s11 = scalar_lea.hbm %s702_s4, 128 }
 0x153   :  { %p533_p1 = scmp.ne.s32.totalorder %s702_s4, %s532_s11  ;;  %p536_p2 = scmp.lt.u32.totalorder %s532_s11, %s702_s4 }
 0x155   :  { %p538_p3 = pnand %p536_p2, %p533_p1 }
 0x157   :  { %541 = shalt.err (!%p538_p3)
}
 0x158   :  { %270 = dma.vmem_to_hbm [thread:$0]  %s268_s6, 128, %s702_s4, [#allocation4]  }
 0x159   :  { %s542_s17 = scalar_lea.vmem %s667_s8, 128  ;;  %p547_p5 = scmp.lt.s32.totalorder %s667_s8, %s667_s8 }
 0x15a   :  { %p543_p4 = scmp.ne.s32.totalorder %s667_s8, %s542_s17  ;;  %p548_p6 = scmp.lt.s32.totalorder %s542_s17, %s542_s17 }
 0x15c   :  { %p549_p7 = por %p548_p6, %p547_p5 }
 0x15e   :  { %p550_p8 = pnand %p549_p7, %p543_p4 }
 0x160   :  { %553 = shalt.err (!%p550_p8)
}
 0x161   :  { %s554_s20 = scalar_lea.hbm %s703_s5, 128 }
 0x162   :  { %p555_p9 = scmp.ne.s32.totalorder %s703_s5, %s554_s20  ;;  %p558_p10 = scmp.lt.u32.totalorder %s554_s20, %s703_s5 }
 0x164   :  { %p560_p11 = pnand %p558_p10, %p555_p9 }
 0x166   :  { %563 = shalt.err (!%p560_p11)
}
 0x167   :  { %280 = dma.vmem_to_hbm [thread:$0]  %s667_s8, 128, %s703_s5, [#allocation10]  }
 0x168   :  { %568 = dma.done.wait [#allocation4], 128  }
 0x169   :  { %569 = vsyncadd [#allocation4], 4294967168 }
 0x16a   :  { %570 = dma.done.wait [#allocation10], 128  }
 0x16b   :  { %571 = vsyncadd [#allocation10], 4294967168 }
 0x16c   :  { %287 = vsyncpa [#allocation3], 1 }
 0x16d   :  { %288 = vsyncpa [#allocation6], 1 }
 0x16e   :  { %289 = vsyncpa [#allocation4], 1 }
 0x16f   :  { %290 = vsyncpa [#allocation10], 1 }

</bundles_post_ra>
